<compile_context>
chip_gen: v6e
topology: v6e:2x2x1
jax: 0.10.0
libtpu: 0.0.40
codegen_flags: <defaults>
</compile_context>

<pallas_src>
import jax
import jax.numpy as jnp
from jax.experimental import pallas as pl
from jax.experimental.pallas import tpu as pltpu

SIGNAL_SHAPE = 100
SEQ = 64
HIDDEN = 20


def critic_x_kernel(x_ref, w_ref, b_ref, o_ref):
    # x_ref: (64, signal) in VMEM (any dtype, cast here)
    # w_ref: (1, signal)  fused effective weight, lane-dense
    # b_ref: (1,) f32 scalar in SMEM (fused effective bias)
    x = x_ref[...].astype(jnp.float32)            # (64, signal)
    w = w_ref[...]                                 # (1, signal), broadcasts over sublanes
    # VPU mul + XLU lane-reduce; avoids a 1-column MXU matmul.
    out = jnp.sum(x * w, axis=-1, keepdims=True)   # (64, 1) f32
    o_ref[...] = out + b_ref[0]


def fuse_params(w1, b1, w2, b2):
    """Exact fusion of dense1 followed by dense2 (no nonlinearity between)."""
    # w1: (signal, 20), b1: (1, 20), w2: (20, 1), b2: (1, 1)
    w_eff = jnp.reshape(w1 @ w2, (1, -1)).astype(jnp.float32)   # (1, signal) lane-dense
    b_eff = jnp.reshape(b1 @ w2 + b2, (1,)).astype(jnp.float32)  # (1,) scalar
    return w_eff, b_eff


def critic_x_fused_forward(x, w_eff, b_eff, signal_shape=SIGNAL_SHAPE):
    # Mirror `x.view(1, 64, signal_shape)`; the .float() cast happens in-kernel.
    x2d = jnp.reshape(x, (SEQ, signal_shape))

    out2d = pl.pallas_call(
        critic_x_kernel,
        out_shape=jax.ShapeDtypeStruct((SEQ, 1), jnp.float32),
        in_specs=[
            pl.BlockSpec((SEQ, signal_shape), lambda: (0, 0)),
            pl.BlockSpec((1, signal_shape), lambda: (0, 0)),
            pl.BlockSpec(memory_space=pltpu.MemorySpace.SMEM),
        ],
        out_specs=pl.BlockSpec((SEQ, 1), lambda: (0, 0)),
    )(x2d, w_eff, b_eff)

    return jnp.reshape(out2d, (1, SEQ, 1))


def critic_x_forward(x, w1, b1, w2, b2, signal_shape=SIGNAL_SHAPE):
    """Same interface/semantics as the PyTorch CriticX.forward."""
    w_eff, b_eff = fuse_params(w1, b1, w2, b2)
    return critic_x_fused_forward(x, w_eff, b_eff, signal_shape)


def init_params(key, signal_shape=SIGNAL_SHAPE):
    # Deterministic init mimicking nn.Linear's U(-1/sqrt(fan_in), 1/sqrt(fan_in)).
    k1, k2, k3, k4 = jax.random.split(key, 4)
    lim1 = 1.0 / jnp.sqrt(jnp.float32(signal_shape))
    lim2 = 1.0 / jnp.sqrt(jnp.float32(HIDDEN))
    w1 = jax.random.uniform(k1, (signal_shape, HIDDEN), jnp.float32, -lim1, lim1)
    b1 = jax.random.uniform(k2, (1, HIDDEN), jnp.float32, -lim1, lim1)
    w2 = jax.random.uniform(k3, (HIDDEN, 1), jnp.float32, -lim2, lim2)
    b2 = jax.random.uniform(k4, (1, 1), jnp.float32, -lim2, lim2)
    return w1, b1, w2, b2


if __name__ == "__main__":
    key = jax.random.PRNGKey(0)
    kx, kp = jax.random.split(key)

    # Input consistent with forward's view(1, 64, signal_shape)
    x = jax.random.normal(kx, (1, SEQ, SIGNAL_SHAPE), jnp.float32)
    w1, b1, w2, b2 = init_params(kp)

    out = critic_x_forward(x, w1, b1, w2, b2)
    out = jax.block_until_ready(out)

    # Pure-JAX unfused reference check (original two-Linear form).
    ref = jnp.reshape(x, (SEQ, SIGNAL_SHAPE)).astype(jnp.float32) @ w1 + b1
    ref = (ref @ w2 + b2).reshape(1, SEQ, 1)
    assert out.shape == (1, SEQ, 1)
    assert jnp.allclose(out, ref, atol=1e-4, rtol=1e-4)

    print("KERNEL_OK")
</pallas_src>

<mosaic_0001>
module attributes {stable_mosaic.version = 11 : i64} {
  func.func @critic_x_kernel(%arg0: memref<64x100xf32, #tpu.memory_space<vmem>>, %arg1: memref<1x100xf32, #tpu.memory_space<vmem>>, %arg2: memref<1xf32, #tpu.memory_space<smem>>, %arg3: memref<64x1xf32, #tpu.memory_space<vmem>>) attributes {dimension_semantics = [], scalar_prefetch = 0 : i64, scratch_operands = 0 : i64, tpu.core_type = #tpu.core_type<tc>} {
    %c0 = arith.constant 0 : index
    %c0_0 = arith.constant 0 : index
    %0 = vector.load %arg0[%c0, %c0_0] : memref<64x100xf32, #tpu.memory_space<vmem>>, vector<64x100xf32>
    %c0_1 = arith.constant 0 : index
    %c0_2 = arith.constant 0 : index
    %1 = vector.load %arg1[%c0_1, %c0_2] : memref<1x100xf32, #tpu.memory_space<vmem>>, vector<1x100xf32>
    %2 = vector.broadcast %1 : vector<1x100xf32> to vector<64x100xf32>
    %3 = arith.mulf %0, %2 : vector<64x100xf32>
    %cst = arith.constant dense<0.000000e+00> : vector<64xf32>
    %4 = vector.multi_reduction <add>, %3, %cst [1] : vector<64x100xf32> to vector<64xf32>
    %5 = vector.shape_cast %4 : vector<64xf32> to vector<64x1xf32>
    %c0_3 = arith.constant 0 : index
    %6 = memref.load %arg2[%c0_3] : memref<1xf32, #tpu.memory_space<smem>>
    %7 = vector.broadcast %6 : f32 to vector<64x1xf32>
    %8 = arith.addf %5, %7 : vector<64x1xf32>
    %c0_4 = arith.constant 0 : index
    %c0_5 = arith.constant 0 : index
    %9 = vector.load %arg3[%c0_4, %c0_5] : memref<64x1xf32, #tpu.memory_space<vmem>>, vector<64x1xf32>
    tpu.vector_store %arg3[%c0_4, %c0_5], %8 {strides = array<i32>} : memref<64x1xf32, #tpu.memory_space<vmem>>, vector<64x1xf32>,
    return
  }
}

</mosaic_0001>

<bundles_post_ra>
// kernel: tpu_custom_call.1
= control target key start
LH: loop header
LB: loop body
LE: loop exit
PB: predicated region body
PF: predicated region fallthrough
CT: control target
= control target key end

     0   :  { %9 = vsyncpa [#allocation4], 0  ;;  %s127_s12 = smov [#allocation3]   ;;  %s199_s0 = inlined_call_operand.hbm [shape: f32[64,100], index: 0, kind: input, shape index: {}]   ;;  %s200_s1 = inlined_call_operand.vmem [shape: f32[1,100], index: 1, kind: input, shape index: {}]   ;;  %s201_s2 = inlined_call_operand.<no memory space> [shape: f32[1], index: 2, kind: input, shape index: {}]   ;;  %s202_s3 = inlined_call_operand.vmem [shape: f32[64,1], index: 3, kind: output, shape index: {}]  }
   0x1   :  { %s15_s13 = sshll.u32 %s127_s12, 4  ;;  %s16_s13 = int_to_ptr.vmem [resolvable:$true] %s15_s13 }
   0x2   :  { %s113_s14 = scalar_lea.vmem %s16_s13, 1024  ;;  %p118_p1 = scmp.lt.s32.totalorder %s16_s13, %s16_s13 }
   0x3   :  { %p114_p0 = scmp.ne.s32.totalorder %s16_s13, %s113_s14  ;;  %p119_p2 = scmp.lt.s32.totalorder %s113_s14, %s113_s14 }
   0x5   :  { %p120_p3 = por %p119_p2, %p118_p1 }
   0x7   :  { %p121_p4 = pnand %p120_p3, %p114_p0 }
   0x9   :  { %124 = shalt.err (!%p121_p4)
}
   0xa   :  { %s128_s15 = smov 128   ;;  %s129_s16 = smov 8  }
   0xb   :  { %21 = dma.hbm_to_vmem [thread:$0]  %s199_s0, 1024, %s16_s13, [#allocation4], %s128_s15, %s128_s15, %s129_s16  }
   0xc   :  { %125 = dma.done.wait [#allocation4], 1024  }
   0xd   :  { %126 = vsyncadd [#allocation4], 4294966272  ;;  %v31_v0 = vld [vmem:[#allocation3 + $0x10] sm:$0xff]  ;;  %v101_v1 = vld [vmem:[%s200_s1] ss:$0 sm:$0xff]  ;;  %vm52_vm0 = vcmask 818176   ;;  %v78_v25 = vstv %s201_s2 }
   0xe   :  { %v29_v2 = vld [vmem:[#allocation3] sm:$0xff]  ;;  %v46_v3 = vmul.f32 %v101_v1, %v31_v0  ;;  %v32_v5 = vld [vmem:[#allocation3 + $0x18] sm:$0xff]  ;;  %v30_v6 = vld [vmem:[#allocation3 + $0x8] sm:$0xff]  ;;  %vm87_vm1 = vcmask 7168  }
   0xf   :  { %v44_v4 = vmul.f32 %v101_v1, %v29_v2  ;;  %v47_v7 = vmul.f32 %v101_v1, %v32_v5  ;;  %v45_v8 = vmul.f32 %v101_v1, %v30_v6  ;;  %v34_v9 = vld [vmem:[#allocation3 + $0x28] sm:$0xff]  ;;  %v33_v10 = vld [vmem:[#allocation3 + $0x20] sm:$0xff]  ;;  %v36_v17 = vld [vmem:[#allocation3 + $0x38] sm:$0xff] }
  0x10   :  { %v59_v11 = vsel %vm52_vm0, %v46_v3, 0.0  ;;  %v49_v15 = vmul.f32 %v101_v1, %v34_v9  ;;  %v48_v16 = vmul.f32 %v101_v1, %v33_v10  ;;  %v35_v18 = vld [vmem:[#allocation3 + $0x30] sm:$0xff]  ;;  %v51_v21 = vmul.f32 %v101_v1, %v36_v17 }
  0x11   :  { %v53_v12 = vsel %vm52_vm0, %v44_v4, 0.0  ;;  %60 = vadd.xlane.f32.xlu1 %v59_v11  ;;  %v62_v13 = vsel %vm52_vm0, %v47_v7, 0.0  ;;  %v56_v14 = vsel %vm52_vm0, %v45_v8, 0.0  ;;  %v50_v22 = vmul.f32 %v101_v1, %v35_v18 }
  0x12   :  { %54 = vadd.xlane.f32.xlu0 %v53_v12  ;;  %v68_v19 = vsel %vm52_vm0, %v49_v15, 0.0  ;;  %v65_v20 = vsel %vm52_vm0, %v48_v16, 0.0  ;;  %v74_v23 = vsel %vm52_vm0, %v51_v21, 0.0 }
  0x13   :  { %v71_v24 = vsel %vm52_vm0, %v50_v22, 0.0 }
  0x15   :  { %63 = vadd.xlane.f32.xlu1 %v62_v13 }
  0x16   :  { %57 = vadd.xlane.f32.xlu0 %v56_v14 }
  0x19   :  { %69 = vadd.xlane.f32.xlu1 %v68_v19 }
  0x1a   :  { %66 = vadd.xlane.f32.xlu0 %v65_v20 }
  0x1d   :  { %75 = vadd.xlane.f32.xlu1 %v74_v23 }
  0x1e   :  { %72 = vadd.xlane.f32.xlu0 %v71_v24 }
  0x9a   :  { %v61_v26 = vpop.xlane.xlu1 %60 }
  0x9b   :  { %v55_v27 = vpop.xlane.xlu0 %54  ;;  %v81_v28 = vadd.f32 %v78_v25, %v61_v26 }
  0x9c   :  { %v79_v29 = vadd.f32 %v78_v25, %v55_v27 }
  0x9d   :  { %90 = vst.msk [vmem:[%s202_s3 + $0x10] sm:$0xff] %vm87_vm1, %v81_v28 }
  0x9e   :  { %88 = vst.msk [vmem:[%s202_s3] sm:$0xff] %vm87_vm1, %v79_v29  ;;  %v64_v30 = vpop.xlane.xlu1 %63 }
  0x9f   :  { %v58_v31 = vpop.xlane.xlu0 %57  ;;  %v82_v32 = vadd.f32 %v78_v25, %v64_v30 }
  0xa0   :  { %v80_v33 = vadd.f32 %v78_v25, %v58_v31 }
  0xa1   :  { %91 = vst.msk [vmem:[%s202_s3 + $0x18] sm:$0xff] %vm87_vm1, %v82_v32 }
  0xa2   :  { %89 = vst.msk [vmem:[%s202_s3 + $0x8] sm:$0xff] %vm87_vm1, %v80_v33  ;;  %v70_v34 = vpop.xlane.xlu1 %69 }
  0xa3   :  { %v67_v35 = vpop.xlane.xlu0 %66  ;;  %v84_v36 = vadd.f32 %v78_v25, %v70_v34 }
  0xa4   :  { %v83_v37 = vadd.f32 %v78_v25, %v67_v35 }
  0xa5   :  { %93 = vst.msk [vmem:[%s202_s3 + $0x28] sm:$0xff] %vm87_vm1, %v84_v36 }
  0xa6   :  { %92 = vst.msk [vmem:[%s202_s3 + $0x20] sm:$0xff] %vm87_vm1, %v83_v37  ;;  %v76_v38 = vpop.xlane.xlu1 %75 }
  0xa7   :  { %v73_v39 = vpop.xlane.xlu0 %72  ;;  %v86_v40 = vadd.f32 %v78_v25, %v76_v38 }
  0xa8   :  { %v85_v41 = vadd.f32 %v78_v25, %v73_v39 }
  0xa9   :  { %95 = vst.msk [vmem:[%s202_s3 + $0x38] sm:$0xff] %vm87_vm1, %v86_v40 }
  0xaa   :  { %94 = vst.msk [vmem:[%s202_s3 + $0x30] sm:$0xff] %vm87_vm1, %v85_v41 }
  0xab   :  { %100 = vsyncpa [#allocation4], 1 }

</bundles_post_ra>
